<compile_context>
chip_gen: v7x
topology: tpu7x:2x2x1
jax: 0.10.0
libtpu: 0.0.40
codegen_flags: <defaults>
</compile_context>

<pallas_src>
import functools

import jax
import jax.numpy as jnp
from jax import lax
from jax.experimental import pallas as pl
from jax.experimental.pallas import tpu as pltpu


def _round_up(x: int, m: int) -> int:
    return ((x + m - 1) // m) * m


def _vmem_capacity_bytes() -> int:
    """Physical VMEM per core; conservative fallback if the query is unavailable."""
    try:
        cap = getattr(pltpu.get_tpu_info(), "vmem_capacity_bytes", None)
        if cap:
            return int(cap)
    except Exception:
        pass
    return 64 * 1024 * 1024  # assume the smallest (v7x-like) part


def _ce_loss_kernel(preds_ref, targets_ref, out_ref, *, n_rows, ignore_index):
    """One batch tile: accumulate sum of per-row NLL and count of valid rows.

    preds_ref:   (TILE_N, C)  native dtype, VMEM (pipelined)
    targets_ref: (TILE_N, 1)  int32, VMEM (tiny HBM traffic)
    out_ref:     (1, 2)       f32, SMEM; per-core row: [0,0]=sum(nll) [0,1]=count
    """
    i = pl.program_id(1)

    @pl.when(i == 0)
    def _init():
        out_ref[0, 0] = jnp.float32(0.0)
        out_ref[0, 1] = jnp.float32(0.0)

    logits = preds_ref[...].astype(jnp.float32)   # f32 VPU math is safe on all gens
    tn, c = logits.shape

    # numerically-stable logsumexp per row (exp/log go to the EUP)
    row_max = jnp.max(logits, axis=-1, keepdims=True)                            # (tn, 1)
    shifted = logits - row_max                                                    # (tn, c)
    lse = jnp.log(jnp.sum(jnp.exp(shifted), axis=-1, keepdims=True))              # (tn, 1)

    # gather the target logit (already max-shifted) with one select pass
    tgt = targets_ref[...]                                                        # (tn, 1) i32
    col = lax.broadcasted_iota(jnp.int32, (tn, c), 1)
    tgt_shifted = jnp.sum(jnp.where(col == tgt, shifted, 0.0),
                          axis=-1, keepdims=True)                                 # (tn, 1)

    # logical (unclamped) block index -> global row ids; masks both the partial
    # last block's garbage tail and any clamped duplicate block, plus ignore_index.
    blk = pl.program_id(0) * pl.num_programs(1) + pl.program_id(1)
    rows = blk * tn + lax.broadcasted_iota(jnp.int32, (tn, 1), 0)
    valid = jnp.logical_and(rows < n_rows, tgt != ignore_index)

    # where(...) (not *mask) so NaN/Inf in out-of-bounds rows cannot poison the sum
    nll = jnp.where(valid, lse - tgt_shifted, 0.0)                                # (tn, 1)
    out_ref[0, 0] += jnp.sum(nll)
    out_ref[0, 1] += jnp.sum(valid.astype(jnp.float32))


def cross_entropy_loss(emb, preds, targets, *, ignore_index=-100, max_tile_rows=None):
    """Mirror of physioex CrossEntropyLoss.forward(emb, preds, targets); emb unused."""
    del emb
    n, c = preds.shape

    # ---- generation-aware sizing -------------------------------------------------
    vmem_cap = _vmem_capacity_bytes()
    if vmem_cap >= 100 * 1024 * 1024:          # v5e / v6e: 128 MiB VMEM per core
        buf_budget = 4 * 1024 * 1024           # per in-flight f32 working buffer
        vmem_limit = 64 * 1024 * 1024
    else:                                       # v7x: 64 MiB VMEM per core
        buf_budget = 3 * 1024 * 1024
        vmem_limit = 48 * 1024 * 1024

    # VMEM rows are lane-padded: a (tile_n, C) f32 buffer costs round_up(C,128)*4
    # bytes/row and the (tile_n, 1) target / per-row vectors cost ~512 bytes/row.
    row_bytes = _round_up(c, 128) * 4 + 512
    tile_n = buf_budget // max(1, row_bytes)
    if max_tile_rows is not None:
        tile_n = min(tile_n, int(max_tile_rows))
    tile_n = min(tile_n, _round_up(n, 8))
    tile_n = max(8, (tile_n // 8) * 8)

    num_tiles = pl.cdiv(n, tile_n)
    # Leading "parallel" axis feeds both v7x TensorCores (pure loop on v5e/v6e).
    n_split = 2 if num_tiles >= 2 else 1
    tiles_per_core = pl.cdiv(num_tiles, n_split)
    max_block = num_tiles - 1                  # clamp OOB block index; masked in-kernel

    targets_in = targets.astype(jnp.int32).reshape(n, 1)

    def block_map(p, i):
        return (jnp.minimum(p * tiles_per_core + i, max_block), 0)

    kernel = functools.partial(_ce_loss_kernel, n_rows=n, ignore_index=ignore_index)

    out = pl.pallas_call(
        kernel,
        out_shape=jax.ShapeDtypeStruct((n_split, 2), jnp.float32),
        grid_spec=pltpu.PrefetchScalarGridSpec(
            num_scalar_prefetch=0,
            grid=(n_split, tiles_per_core),
            in_specs=[
                pl.BlockSpec((tile_n, c), block_map),   # logits tile (pipelined)
                pl.BlockSpec((tile_n, 1), block_map),   # int32 targets (tiny)
            ],
            out_specs=pl.BlockSpec((1, 2), lambda p, i: (p, 0),
                                   memory_space=pltpu.SMEM),
        ),
        compiler_params=pltpu.CompilerParams(
            dimension_semantics=("parallel", "arbitrary"),
            vmem_limit_bytes=vmem_limit,
        ),
    )(preds, targets_in)

    # mean over non-ignored rows (PyTorch CrossEntropyLoss default reduction="mean")
    total = jnp.sum(out, axis=0)
    return total[0] / total[1]


def _ref_loss(preds, targets, ignore_index=-100):
    logp = jax.nn.log_softmax(preds.astype(jnp.float32), axis=-1)
    mask = targets != ignore_index
    safe_t = jnp.where(mask, targets, 0)
    gathered = logp[jnp.arange(preds.shape[0]), safe_t]
    return -jnp.sum(jnp.where(mask, gathered, 0.0)) / jnp.sum(mask)


if __name__ == "__main__":
    key = jax.random.PRNGKey(0)
    k_emb, k_p1, k_t1, k_p2, k_t2, k_p3, k_t3 = jax.random.split(key, 7)

    # --- small case matching the module's usage ---------------------------------
    batch, n_classes, hidden = 8, 5, 32
    emb = jax.random.normal(k_emb, (batch, hidden), dtype=jnp.float32)   # unused by loss
    preds = jax.random.normal(k_p1, (batch, n_classes), dtype=jnp.float32)
    targets = jax.random.randint(k_t1, (batch,), 0, n_classes, dtype=jnp.int32)

    loss = cross_entropy_loss(emb, preds, targets)
    jax.block_until_ready(loss)
    ref = _ref_loss(preds, targets)
    assert jnp.allclose(loss, ref, atol=1e-5, rtol=1e-5), (loss, ref)

    # --- non-divisible batch + ignore_index (partial block + masking) -----------
    batch2, n_classes2 = 37, 11
    preds2 = jax.random.normal(k_p2, (batch2, n_classes2), dtype=jnp.float32)
    targets2 = jax.random.randint(k_t2, (batch2,), 0, n_classes2, dtype=jnp.int32)
    targets2 = targets2.at[3].set(-100)   # ignored row (PyTorch default ignore_index)

    loss2 = cross_entropy_loss(None, preds2, targets2)
    jax.block_until_ready(loss2)
    ref2 = _ref_loss(preds2, targets2)
    assert jnp.allclose(loss2, ref2, atol=1e-5, rtol=1e-5), (loss2, ref2)

    # --- multi-tile path: 2-core split, odd tile count (clamped duplicate block),
    # --- partial last block, ignore_index.  max_tile_rows forces several tiles. ---
    batch3, n_classes3 = 2500, 64
    preds3 = jax.random.normal(k_p3, (batch3, n_classes3), dtype=jnp.float32)
    targets3 = jax.random.randint(k_t3, (batch3,), 0, n_classes3, dtype=jnp.int32)
    targets3 = targets3.at[7].set(-100)

    loss3 = cross_entropy_loss(None, preds3, targets3, max_tile_rows=512)
    jax.block_until_ready(loss3)
    ref3 = _ref_loss(preds3, targets3)
    assert jnp.allclose(loss3, ref3, atol=1e-4, rtol=1e-4), (loss3, ref3)

    print("KERNEL_OK")
</pallas_src>

<mosaic_0001>
module attributes {stable_mosaic.version = 11 : i64} {
  func.func @_ce_loss_kernel(%arg0: i32, %arg1: i32, %arg2: memref<8x5xf32, #tpu.memory_space<vmem>>, %arg3: memref<8x1xi32, #tpu.memory_space<vmem>>, %arg4: memref<1x2xf32, #tpu.memory_space<smem>>) attributes {dimension_semantics = [#tpu.dimension_semantics<parallel>, #tpu.dimension_semantics<arbitrary>], iteration_bounds = array<i64: 1, 1>, scalar_prefetch = 0 : i64, scratch_operands = 0 : i64, tpu.core_type = #tpu.core_type<tc>, window_params = [{transform_indices = @transform_0, window_bounds = array<i64: 8, 5>}, {transform_indices = @transform_1, window_bounds = array<i64: 8, 1>}, {transform_indices = @transform_2, window_bounds = array<i64: 1, 2>}]} {
    %c0_i32 = arith.constant 0 : i32
    %0 = arith.cmpi eq, %arg1, %c0_i32 : i32
    %1 = arith.extui %0 : i1 to i32
    %c0_i32_0 = arith.constant 0 : i32
    %2 = arith.cmpi ne, %1, %c0_i32_0 : i32
    scf.if %2 {
      %cst_18 = arith.constant 0.000000e+00 : f32
      %c0_19 = arith.constant 0 : index
      %c0_20 = arith.constant 0 : index
      %50 = memref.load %arg4[%c0_19, %c0_20] : memref<1x2xf32, #tpu.memory_space<smem>>
      memref.store %cst_18, %arg4[%c0_19, %c0_20] : memref<1x2xf32, #tpu.memory_space<smem>>
      %cst_21 = arith.constant 0.000000e+00 : f32
      %c0_22 = arith.constant 0 : index
      %c1_23 = arith.constant 1 : index
      %51 = memref.load %arg4[%c0_22, %c1_23] : memref<1x2xf32, #tpu.memory_space<smem>>
      memref.store %cst_21, %arg4[%c0_22, %c1_23] : memref<1x2xf32, #tpu.memory_space<smem>>
    } else {
    }
    %c0 = arith.constant 0 : index
    %c0_1 = arith.constant 0 : index
    %3 = vector.load %arg2[%c0, %c0_1] : memref<8x5xf32, #tpu.memory_space<vmem>>, vector<8x5xf32>
    %cst = arith.constant dense<0xFF800000> : vector<8xf32>
    %4 = vector.multi_reduction <maximumf>, %3, %cst [1] : vector<8x5xf32> to vector<8xf32>
    %5 = vector.shape_cast %4 : vector<8xf32> to vector<8x1xf32>
    %6 = vector.broadcast %5 : vector<8x1xf32> to vector<8x5xf32>
    %7 = arith.subf %3, %6 : vector<8x5xf32>
    %8 = math.exp %7 : vector<8x5xf32>
    %cst_2 = arith.constant dense<0.000000e+00> : vector<8xf32>
    %9 = vector.multi_reduction <add>, %8, %cst_2 [1] : vector<8x5xf32> to vector<8xf32>
    %10 = vector.shape_cast %9 : vector<8xf32> to vector<8x1xf32>
    %11 = math.log %10 : vector<8x1xf32>
    %c0_3 = arith.constant 0 : index
    %c0_4 = arith.constant 0 : index
    %12 = vector.load %arg3[%c0_3, %c0_4] : memref<8x1xi32, #tpu.memory_space<vmem>>, vector<8x1xi32>
    %13 = tpu.iota {dimensions = array<i32: 1>} : vector<8x5xi32>
    %14 = vector.broadcast %12 : vector<8x1xi32> to vector<8x5xi32>
    %15 = arith.cmpi eq, %13, %14 : vector<8x5xi32>
    %cst_5 = arith.constant 0.000000e+00 : f32
    %16 = vector.broadcast %cst_5 : f32 to vector<8x5xf32>
    %17 = arith.select %15, %7, %16 : vector<8x5xi1>, vector<8x5xf32>
    %cst_6 = arith.constant dense<0.000000e+00> : vector<8xf32>
    %18 = vector.multi_reduction <add>, %17, %cst_6 [1] : vector<8x5xf32> to vector<8xf32>
    %19 = vector.shape_cast %18 : vector<8xf32> to vector<8x1xf32>
    %c1_i32 = arith.constant 1 : i32
    %20 = arith.muli %arg0, %c1_i32 : i32
    %21 = arith.addi %20, %arg1 : i32
    %c8_i32 = arith.constant 8 : i32
    %22 = arith.muli %21, %c8_i32 : i32
    %23 = tpu.iota {dimensions = array<i32: 0>} : vector<8x1xi32>
    %24 = vector.broadcast %22 : i32 to vector<8x1xi32>
    %25 = arith.addi %24, %23 : vector<8x1xi32>
    %c8_i32_7 = arith.constant 8 : i32
    %26 = vector.broadcast %c8_i32_7 : i32 to vector<8x1xi32>
    %27 = arith.cmpi slt, %25, %26 : vector<8x1xi32>
    %c-100_i32 = arith.constant -100 : i32
    %28 = vector.broadcast %c-100_i32 : i32 to vector<8x1xi32>
    %29 = arith.cmpi ne, %12, %28 : vector<8x1xi32>
    %30 = arith.andi %27, %29 : vector<8x1xi1>
    %31 = arith.subf %11, %19 : vector<8x1xf32>
    %cst_8 = arith.constant 0.000000e+00 : f32
    %32 = vector.broadcast %cst_8 : f32 to vector<8x1xf32>
    %33 = arith.select %30, %31, %32 : vector<8x1xi1>, vector<8x1xf32>
    %c0_9 = arith.constant 0 : index
    %c0_10 = arith.constant 0 : index
    %34 = memref.load %arg4[%c0_9, %c0_10] : memref<1x2xf32, #tpu.memory_space<smem>>
    %35 = vector.shape_cast %33 : vector<8x1xf32> to vector<1x8x1xf32>
    %cst_11 = arith.constant dense<0.000000e+00> : vector<1xf32>
    %36 = vector.multi_reduction <add>, %35, %cst_11 [1, 2] : vector<1x8x1xf32> to vector<1xf32>
    %37 = vector.shape_cast %36 : vector<1xf32> to vector<1x1x1xf32>
    %38 = vector.extract %37[0, 0, 0] : f32 from vector<1x1x1xf32>
    %39 = arith.addf %34, %38 : f32
    %c0_12 = arith.constant 0 : index
    %c0_13 = arith.constant 0 : index
    %40 = memref.load %arg4[%c0_12, %c0_13] : memref<1x2xf32, #tpu.memory_space<smem>>
    memref.store %39, %arg4[%c0_12, %c0_13] : memref<1x2xf32, #tpu.memory_space<smem>>
    %c0_14 = arith.constant 0 : index
    %c1 = arith.constant 1 : index
    %41 = memref.load %arg4[%c0_14, %c1] : memref<1x2xf32, #tpu.memory_space<smem>>
    %42 = arith.extui %30 : vector<8x1xi1> to vector<8x1xi32>
    %43 = arith.sitofp %42 : vector<8x1xi32> to vector<8x1xf32>
    %44 = vector.shape_cast %43 : vector<8x1xf32> to vector<1x8x1xf32>
    %cst_15 = arith.constant dense<0.000000e+00> : vector<1xf32>
    %45 = vector.multi_reduction <add>, %44, %cst_15 [1, 2] : vector<1x8x1xf32> to vector<1xf32>
    %46 = vector.shape_cast %45 : vector<1xf32> to vector<1x1x1xf32>
    %47 = vector.extract %46[0, 0, 0] : f32 from vector<1x1x1xf32>
    %48 = arith.addf %41, %47 : f32
    %c0_16 = arith.constant 0 : index
    %c1_17 = arith.constant 1 : index
    %49 = memref.load %arg4[%c0_16, %c1_17] : memref<1x2xf32, #tpu.memory_space<smem>>
    memref.store %48, %arg4[%c0_16, %c1_17] : memref<1x2xf32, #tpu.memory_space<smem>>
    return
  }
  func.func @transform_0(%arg0: i32, %arg1: i32) -> (i32, i32) {
    %c1_i32 = arith.constant 1 : i32
    %0 = arith.muli %arg0, %c1_i32 : i32
    %1 = arith.addi %0, %arg1 : i32
    %c0_i32 = arith.constant 0 : i32
    %2 = arith.minsi %1, %c0_i32 : i32
    %c0_i32_0 = arith.constant 0 : i32
    %c0_i32_1 = arith.constant 0 : i32
    return %2, %c0_i32_0 : i32, i32
  }
  func.func @transform_1(%arg0: i32, %arg1: i32) -> (i32, i32) {
    %c1_i32 = arith.constant 1 : i32
    %0 = arith.muli %arg0, %c1_i32 : i32
    %1 = arith.addi %0, %arg1 : i32
    %c0_i32 = arith.constant 0 : i32
    %2 = arith.minsi %1, %c0_i32 : i32
    %c0_i32_0 = arith.constant 0 : i32
    %c0_i32_1 = arith.constant 0 : i32
    return %2, %c0_i32_0 : i32, i32
  }
  func.func @transform_2(%arg0: i32, %arg1: i32) -> (i32, i32) {
    %c0_i32 = arith.constant 0 : i32
    %c0_i32_0 = arith.constant 0 : i32
    return %arg0, %c0_i32 : i32, i32
  }
}

</mosaic_0001>

<bundles_post_ra>
// kernel: tpu_custom_call.1
= control target key start
LH: loop header
LB: loop body
LE: loop exit
PB: predicated region body
PF: predicated region fallthrough
CT: control target
= control target key end

     0   :  { %vm75_vm0 = vcmask 39936   ;;  %s231_s0 = inlined_call_operand.vmem [shape: f32[8,5], index: 0, kind: input, shape index: {}]   ;;  %s232_s1 = inlined_call_operand.vmem [shape: s32[8,1], index: 1, kind: input, shape index: {}]   ;;  %s233_s2 = inlined_call_operand.hbm [shape: f32[1,2], index: 2, kind: output, shape index: {}]  }
   0x1   :  { %v74_v0 = vld [vmem:[%s231_s0] sm:$0xff] }
   0x2   :  { %7 = vsyncpa [#allocation3], 0  ;;  %v76_v1 = vsel %vm75_vm0, %v74_v0, -inf  ;;  %v192_v2 = vmov 0   ;;  %v87_v3 = vld [vmem:[%s232_s1] sm:$0xff]  ;;  %v88_v7 = vlaneseq  ;;  %vm110_vm3 = vcmask 7168  }
   0x3   :  { %175 = vset.pattern.permute.xlu0 %v192_v2  ;;  %vm105_vm2 = vcmp.ne.s32.totalorder %v87_v3, 4294967196  ;;  %v193_v20 = vmov 0.0   ;;  %s180_s15 = scalar_lea.hbm %s233_s2, 16 }
   0x4   :  { %77 = vmax.xlane.f32.xlu0 %v76_v1  ;;  %v89_v8 = vand.u32 127, %v88_v7  ;;  %v166_v21 = vsel %vm105_vm2, 1.0, %v193_v20  ;;  %p181_p0 = scmp.ne.s32.totalorder %s233_s2, %s180_s15  ;;  %p184_p1 = scmp.lt.u32.totalorder %s180_s15, %s233_s2 }
   0x5   :  { %v127_v23 = vsel %vm110_vm3, %v166_v21, 0.0 }
   0x6   :  { %p186_p2 = pnand %p184_p1, %p181_p0 }
  0x1a   :  { %91 = vperm.xlu0 %175, %v87_v3  }
  0x91   :  { %v78_v4 = vpop.xlane.xlu0 %77 }
  0x92   :  { %v79_v5 = vsub.f32 %v74_v0, %v78_v4 }
  0x94   :  { %v80_v6 = vmul.f32 1.442695, %v79_v5 }
  0x96   :  { %176 = vpow2.f32 %v80_v6 }
  0x99   :  { %v92_v9 = vpop.permute.xlu0 %91 }
  0x9a   :  { %vm93_vm1 = vcmp.eq.s32.totalorder %v89_v8, %v92_v9 }
  0x9b   :  { %v94_v12 = vsel %vm93_vm1, %v79_v5, 0.0 }
  0x9c   :  { %v95_v13 = vsel %vm75_vm0, %v94_v12, 0.0 }
  0xa0   :  { %v177_v10 = vpop.eup %176 }
  0xa1   :  { %v82_v11 = vsel %vm75_vm0, %v177_v10, 0.0 }
  0xa2   :  { %83 = vadd.xlane.f32.xlu1 %v82_v11 }
  0xa6   :  { %96 = vadd.xlane.f32.xlu1 %v95_v13 }
 0x12f   :  { %v84_v14 = vpop.xlane.xlu1 %83 }
 0x130   :  { %178 = vlog2.f32 %v84_v14 }
 0x133   :  { %v97_v17 = vpop.xlane.xlu1 %96 }
 0x13a   :  { %v179_v15 = vpop.eup %178 }
 0x13b   :  { %v86_v16 = vmul.f32 0.6931472, %v179_v15 }
 0x13d   :  { %v107_v18 = vsub.f32 %v86_v16, %v97_v17 }
 0x13f   :  { %v108_v19 = vsel %vm105_vm2, %v107_v18, 0.0 }
 0x140   :  { %v111_v22 = vsel %vm110_vm3, %v108_v19, 0.0 }
 0x141   :  { %112 = vadd.xlane.f32.xlu1 %v111_v22 }
 0x145   :  { %128 = vadd.xlane.f32.xlu1 %v127_v23 }
 0x1ce   :  { %v113_v24 = vpop.xlane.xlu1 %112 }
 0x1cf   :  { %v114_v25 = vrot.slane %v113_v24, 4 }
 0x1d1   :  { %v115_v26 = vadd.f32 %v114_v25, %v113_v24 }
 0x1d2   :  { %v129_v27 = vpop.xlane.xlu1 %128 }
 0x1d3   :  { %v116_v28 = vrot.slane %v115_v26, 2  ;;  %v130_v29 = vrot.slane %v129_v27, 4 }
 0x1d5   :  { %v131_v30 = vadd.f32 %v130_v29, %v129_v27  ;;  %v117_v31 = vadd.f32 %v116_v28, %v115_v26 }
 0x1d7   :  { %v132_v32 = vrot.slane %v131_v30, 2  ;;  %v118_v33 = vrot.slane %v117_v31, 1 }
 0x1d9   :  { %v133_v34 = vadd.f32 %v132_v32, %v131_v30  ;;  %v119_v35 = vadd.f32 %v118_v33, %v117_v31 }
 0x1db   :  { %167 = vpush %v119_v35  ;;  %v134_v36 = vrot.slane %v133_v34, 1 }
 0x1dd   :  { %v135_v37 = vadd.f32 %v134_v36, %v133_v34 }
 0x1df   :  { %169 = vpush %v135_v37 }
 0x20c   :  { %s168_s0 = spop %167 }
 0x20d   :  { %123 = sst [smem:[#allocation2]] %s168_s0 }
 0x210   :  { %s170_s1 = spop %169 }
 0x211   :  { %139 = sst [smem:[#allocation2 + $0x1]] %s170_s1 }
 0x212   :  { %189 = shalt.err (!%p186_p2)
}
 0x213   :  { %s194_s20 = smov [#allocation2]  }
 0x214   :  { %147 = dma.smem_to_hbm %s194_s20, 16, %s233_s2, [#allocation3]  }
 0x215   :  { %190 = dma.done.wait [#allocation3], 16  }
 0x216   :  { %191 = vsyncadd [#allocation3], 4294967280 }
 0x217   :  { %151 = sfence }
 0x218   :  { %152 = vsyncpa [#allocation3], 1 }

</bundles_post_ra>
